<compile_context>
chip_gen: v7x
topology: tpu7x:2x2x1
jax: 0.10.0
libtpu: 0.0.40
codegen_flags: <defaults>
</compile_context>

<pallas_src>
import functools

import jax
import jax.numpy as jnp
from jax import lax
from jax.experimental import pallas as pl
from jax.experimental.pallas import tpu as pltpu

LANE = 128
SUBLANE = 8


def _round_up(x, m):
    return (x + m - 1) // m * m


def _vmem_budget_bytes():
    """Per-generation scoped-VMEM budget (~3/4 of physical, capped at 96 MiB).

    v5e/v6e (128 MiB physical) -> 96 MiB; v7x (64 MiB per TC) -> 48 MiB.
    Falls back to a conservative 48 MiB if the query is unavailable.
    """
    cap = None
    try:
        info = pltpu.get_tpu_info()
        for attr in ("vmem_capacity_bytes", "vmem_size_bytes", "vmem_bytes"):
            cap = getattr(info, attr, None)
            if cap:
                break
    except Exception:
        cap = None
    if not cap:
        return 48 * 1024 * 1024
    return int(min(96 * 1024 * 1024, (int(cap) * 3) // 4))


def _pick_tile_n(n, per_row_bytes, fixed_bytes, vmem_budget, cap=2048):
    """Largest node tile whose double-buffered streamed blocks fit the budget."""
    headroom = 4 * 1024 * 1024
    avail = max(vmem_budget - 2 * fixed_bytes - headroom, 2 * 1024 * 1024)
    t = int(avail // max(2 * per_row_bytes, 1))
    t = max(SUBLANE, min(cap, t))
    if t >= LANE:
        t = (t // LANE) * LANE
    else:
        t = (t // SUBLANE) * SUBLANE
    t = min(t, _round_up(n, SUBLANE))
    return max(SUBLANE, t)


# ---------------------------------------------------------------------------
# Kernel 1: fused target path.
#   aug aggregation (mean / concate) + concat-onto-target-features written as
#   ONE dense lane-padded slab store, plus the (stand-in) classifier matmul on
#   the same register value.
# ---------------------------------------------------------------------------

def _target_path_kernel(x_ref, *refs, num_aug, e, aug_num, method, inv_a,
                        pad_cols, precision):
    aug_refs = refs[:num_aug]
    w_ref = refs[num_aug]            # (SLAB_P, LOGITS_P)  pre-transposed, padded
    b_ref = refs[num_aug + 1]        # (1, LOGITS_P) f32
    slab_ref = refs[num_aug + 2]     # (TILE_N, SLAB_P) output
    logits_ref = refs[num_aug + 3]   # (TILE_N, LOGITS_P) f32 output

    tile_n = x_ref.shape[0]

    # Build the slab tile as a single value: [x | agg segments | zero tail].
    parts = [x_ref[...]]
    for k in range(num_aug):
        blk = aug_refs[k][...]                      # (TILE_N, aug_num*E), N-major
        if method == 'mean':
            agg = blk[:, 0:e]
            for i in range(1, aug_num):
                agg = agg + blk[:, i * e:(i + 1) * e]
            parts.append(agg * inv_a)               # multiply by 1/A (no divide)
        else:  # 'concate' — copies are already in column order
            parts.append(blk)
    if pad_cols:
        parts.append(jnp.zeros((tile_n, pad_cols), dtype=x_ref.dtype))
    slab = parts[0] if len(parts) == 1 else jnp.concatenate(parts, axis=-1)

    slab_ref[...] = slab                            # ONE dense store

    # Stand-in classifier (see TODO in hpn_aug_forward) on the same value.
    logits_ref[...] = lax.dot_general(
        slab, w_ref[...], (((1,), (0,)), ((), ())),
        preferred_element_type=jnp.float32,
        precision=precision) + b_ref[...]


def target_path_fused(h_target, aug_list, w_cls, b_cls, aug_num, *,
                      method='mean', use_bf16=False):
    """Fused: aug aggregation + concat-onto-target + stand-in classifier.

    h_target: (N, F_t) target node features
    aug_list: list of (A, N, E) stacks (one per augmentation type), A >= aug_num
    w_cls:    (label_num, size_map) PyTorch-layout classifier weight
    b_cls:    (label_num,)
    Returns (h_slab (N, size_map), logits (N, label_num)).
    """
    n, f_t = h_target.shape
    num_aug = len(aug_list)
    assert num_aug >= 1
    a0, n0, e = aug_list[0].shape
    for s in aug_list:
        assert s.shape == (a0, n0, e), "aug stacks must share (A, N, E)"
    assert n0 == n and a0 >= aug_num

    if method == 'mean':
        size_map = f_t + num_aug * e
    elif method == 'concate':
        size_map = f_t + num_aug * aug_num * e
    else:
        raise ValueError(method)
    label_num = w_cls.shape[0]

    cdt = jnp.bfloat16 if use_bf16 else jnp.float32
    in_bytes = 2 if use_bf16 else 4
    precision = None if use_bf16 else lax.Precision.HIGHEST

    slab_p = _round_up(size_map, LANE)
    logits_p = _round_up(label_num, LANE)
    pad_cols = slab_p - size_map

    # N-major, lane-dense re-layout of each aug stack: (A,N,E) -> (N, aug_num*E).
    # TODO(synk): have the augmentation producer emit this layout directly to
    # avoid the wrapper-side transpose copy.
    x = h_target.astype(cdt)
    aug_flat = [jnp.transpose(s[:aug_num].astype(cdt), (1, 0, 2))
                .reshape(n, aug_num * e) for s in aug_list]

    # Classifier params: transpose ONCE here (inside the padding op) so the
    # kernel contracts (M,K)x(K,N); zero rows/cols keep logits identical.
    w_pad = jnp.pad(w_cls.T.astype(cdt),
                    ((0, slab_p - size_map), (0, logits_p - label_num)))
    b_pad = jnp.pad(b_cls.astype(jnp.float32)[None, :],
                    ((0, 0), (0, logits_p - label_num)))

    vmem_budget = _vmem_budget_bytes()
    per_row = (f_t + num_aug * aug_num * e + slab_p) * in_bytes + logits_p * 4
    fixed = slab_p * logits_p * in_bytes + logits_p * 4
    tile_n = _pick_tile_n(n, per_row, fixed, vmem_budget)
    grid = (pl.cdiv(n, tile_n),)
    # NOTE: when N % tile_n != 0 the final tile reads past the end of the node
    # axis; that is benign because only the output blocks are masked and the
    # kernel performs no cross-row reductions.

    kernel = functools.partial(
        _target_path_kernel, num_aug=num_aug, e=e, aug_num=aug_num,
        method=method, inv_a=float(1.0 / aug_num), pad_cols=pad_cols,
        precision=precision)

    in_specs = [pl.BlockSpec((tile_n, f_t), lambda i: (i, 0))]
    in_specs += [pl.BlockSpec((tile_n, aug_num * e), lambda i: (i, 0))
                 for _ in range(num_aug)]
    in_specs += [pl.BlockSpec((slab_p, logits_p), lambda i: (0, 0)),
                 pl.BlockSpec((1, logits_p), lambda i: (0, 0))]
    out_specs = (pl.BlockSpec((tile_n, slab_p), lambda i: (i, 0)),
                 pl.BlockSpec((tile_n, logits_p), lambda i: (i, 0)))

    slab, logits = pl.pallas_call(
        kernel,
        grid=grid,
        in_specs=in_specs,
        out_specs=out_specs,
        out_shape=(jax.ShapeDtypeStruct((n, slab_p), cdt),
                   jax.ShapeDtypeStruct((n, logits_p), jnp.float32)),
        compiler_params=pltpu.CompilerParams(
            dimension_semantics=("parallel",),
            vmem_limit_bytes=vmem_budget),
    )(x, *aug_flat, w_pad, b_pad)

    return slab[:, :size_map], logits[:, :label_num]


# ---------------------------------------------------------------------------
# Kernel 2: batched per-ntype nn.Linear (look_up_table) in ONE pallas_call.
# ---------------------------------------------------------------------------

def _batched_linear_kernel(x_ref, w_ref, b_ref, o_ref, *, precision):
    o_ref[...] = lax.dot_general(
        x_ref[...], w_ref[...], (((1,), (0,)), ((), ())),   # x @ W.T (W pre-T'd)
        preferred_element_type=jnp.float32,
        precision=precision) + b_ref[...]


def batched_lookup_linear(xs, weights, biases, *, use_bf16=False):
    """Apply per-type nn.Linear (y = x @ W.T + b) for all types in one call.

    xs:      list of (N_t, Fin_t)
    weights: list of (Fout, Fin_t)  (PyTorch convention)
    biases:  list of (Fout,)
    Returns list of (N_t, Fout) f32 outputs.
    """
    t = len(xs)
    fout = weights[0].shape[0]
    assert all(w.shape[0] == fout for w in weights)

    cdt = jnp.bfloat16 if use_bf16 else jnp.float32
    in_bytes = 2 if use_bf16 else 4
    precision = None if use_bf16 else lax.Precision.HIGHEST

    # Fin is NOT padded to 128 in HBM — the block's last dim equals the full
    # array extent, so no 4-8x zero-read on a memory-bound kernel.
    fin_max = max(x.shape[1] for x in xs)
    fout_p = _round_up(fout, LANE)          # lane-dense output writeback
    n_max = max(x.shape[0] for x in xs)

    vmem_budget = _vmem_budget_bytes()
    per_row = fin_max * in_bytes + fout_p * 4
    fixed = fin_max * fout_p * in_bytes + fout_p * 4
    tile_n = _pick_tile_n(n_max, per_row, fixed, vmem_budget)
    n_pad = _round_up(n_max, tile_n)

    # One-shot staging (pad + stack); W transposed here, never in the kernel.
    # TODO(synk): for heavily skewed node counts, switch to a concatenated
    # (sum N_t, Fin) array + PrefetchScalarGridSpec row offsets.
    x_stack = jnp.stack([
        jnp.pad(x.astype(cdt),
                ((0, n_pad - x.shape[0]), (0, fin_max - x.shape[1])))
        for x in xs])
    w_stack = jnp.stack([
        jnp.pad(w.T.astype(cdt),
                ((0, fin_max - w.shape[1]), (0, fout_p - fout)))
        for w in weights])
    b_stack = jnp.stack([
        jnp.pad(b.astype(jnp.float32)[None, :], ((0, 0), (0, fout_p - fout)))
        for b in biases])

    kernel = functools.partial(_batched_linear_kernel, precision=precision)

    # Node-tile-major leading parallel axis: both v7x TensorCores split node
    # tiles evenly even when node counts per type are skewed; the per-type W
    # block is tiny so its re-fetch is cheap.
    grid = (n_pad // tile_n, t)
    out = pl.pallas_call(
        kernel,
        grid=grid,
        in_specs=[
            pl.BlockSpec((None, tile_n, fin_max), lambda i, k: (k, i, 0)),
            pl.BlockSpec((None, fin_max, fout_p), lambda i, k: (k, 0, 0)),
            pl.BlockSpec((None, 1, fout_p), lambda i, k: (k, 0, 0)),
        ],
        out_specs=pl.BlockSpec((None, tile_n, fout_p), lambda i, k: (k, i, 0)),
        out_shape=jax.ShapeDtypeStruct((t, n_pad, fout_p), jnp.float32),
        compiler_params=pltpu.CompilerParams(
            dimension_semantics=("parallel", "parallel"),
            vmem_limit_bytes=vmem_budget),
    )(x_stack, w_stack, b_stack)

    return [out[k, :xs[k].shape[0], :fout] for k in range(t)]


# ---------------------------------------------------------------------------
# HPN_AUG forward (is_augmentation=True path)
# ---------------------------------------------------------------------------

def hpn_aug_forward(params, node_feats, aug_feats, augmentated_types,
                    augmentated_num, method, target_category, ntypes,
                    use_bf16=False):
    # NOTE: at toy shapes (N ~ 10) Pallas is pure launch overhead vs fused XLA;
    # this path targets the large-N deployment regime (set use_bf16=True there,
    # including on v5e whose MXU is bf16-native).

    aug_list = [aug_feats[ty] for ty in augmentated_types]
    h_target, logits = target_path_fused(
        node_feats[target_category], aug_list,
        params['cls_w'], params['cls_b'], augmentated_num,
        method=method, use_bf16=use_bf16)

    # look_up_table: identity for the target category, nn.Linear otherwise —
    # all non-target ntypes batched into a single pallas_call.
    feat_dict = {target_category: h_target}
    other = [nt for nt in ntypes if nt != target_category]
    if other:
        outs = batched_lookup_linear(
            [node_feats[nt] for nt in other],
            [params['lut'][nt][0] for nt in other],
            [params['lut'][nt][1] for nt in other],
            use_bf16=use_bf16)
        for nt, o in zip(other, outs):
            feat_dict[nt] = o

    # TODO(synk): the HPN message-passing model (meta-path propagation with
    # k_layer / alpha / edge_drop over the DGL graph) is not provided in the
    # reference; the fused linear classifier on the target slab is the
    # logits-producing stand-in.
    return logits, feat_dict


# ---------------------------------------------------------------------------
# Driver
# ---------------------------------------------------------------------------

if __name__ == "__main__":
    key = jax.random.PRNGKey(0)

    # Synthetic heterogeneous-graph configuration (small shapes).
    ntypes = ['paper', 'author', 'subject']
    target_category = 'paper'
    category_index = {'paper': 0, 'author': 1, 'subject': 2}
    feature_sizes = [16, 24, 32]
    node_counts = {'paper': 8, 'author': 12, 'subject': 6}

    embedding_size = 8
    augmentated_types = ['aug_t0', 'aug_t1']      # == config.arg_argmentation_type
    augmentated_num = 3
    method = 'mean'
    label_num = 4

    # Mapped feature dim for non-target ntypes (is_augmentation=True branch):
    size_map = embedding_size * len(augmentated_types) + \
        feature_sizes[category_index[target_category]]      # 8*2 + 16 = 32

    # ---- deterministic inputs -------------------------------------------
    keys = iter(jax.random.split(key, 64))

    node_feats = {
        nt: jax.random.normal(next(keys),
                              (node_counts[nt],
                               feature_sizes[category_index[nt]]),
                              dtype=jnp.float32)
        for nt in ntypes
    }
    aug_feats = {
        ty: jax.random.normal(next(keys),
                              (augmentated_num,
                               node_counts[target_category],
                               embedding_size),
                              dtype=jnp.float32)
        for ty in augmentated_types
    }

    # ---- deterministic parameters ---------------------------------------
    params = {'lut': {}}
    for nt in ntypes:
        if nt == target_category:
            continue
        fin = feature_sizes[category_index[nt]]
        w = jax.random.normal(next(keys), (size_map, fin), jnp.float32) * 0.05
        b = jax.random.normal(next(keys), (size_map,), jnp.float32) * 0.01
        params['lut'][nt] = (w, b)
    params['cls_w'] = jax.random.normal(next(keys),
                                        (label_num, size_map), jnp.float32) * 0.05
    params['cls_b'] = jnp.zeros((label_num,), jnp.float32)

    # ---- run (f32 path, tight checks) ------------------------------------
    logits, feat_dict = hpn_aug_forward(
        params, node_feats, aug_feats, augmentated_types,
        augmentated_num, method, target_category, ntypes,
        use_bf16=False)

    logits = jax.block_until_ready(logits)
    for v in feat_dict.values():
        jax.block_until_ready(v)

    hi = jax.lax.Precision.HIGHEST
    assert logits.shape == (node_counts[target_category], label_num)
    assert feat_dict[target_category].shape == (node_counts[target_category],
                                                size_map)
    # target slab columns: [paper feats | mean(aug_t0) | mean(aug_t1)]
    assert jnp.allclose(feat_dict[target_category][:, :16],
                        node_feats['paper'], atol=1e-5)
    ref_mean0 = jnp.mean(aug_feats['aug_t0'], axis=0)
    assert jnp.allclose(feat_dict[target_category][:, 16:16 + embedding_size],
                        ref_mean0, atol=1e-5)
    ref_mean1 = jnp.mean(aug_feats['aug_t1'], axis=0)
    assert jnp.allclose(feat_dict[target_category][:, 24:24 + embedding_size],
                        ref_mean1, atol=1e-5)
    # per-ntype look_up_table linears
    for nt in ['author', 'subject']:
        w, b = params['lut'][nt]
        ref_lin = jnp.dot(node_feats[nt], w.T, precision=hi) + b
        assert jnp.allclose(ref_lin, feat_dict[nt], atol=1e-3)
    # fused classifier (stand-in) on the target slab
    ref_logits = jnp.dot(feat_dict[target_category], params['cls_w'].T,
                         precision=hi) + params['cls_b']
    assert jnp.allclose(ref_logits, logits, atol=1e-3)

    # ---- run (bf16 path, as deployed on v5e/v6e/v7x) ---------------------
    logits_bf, feat_bf = hpn_aug_forward(
        params, node_feats, aug_feats, augmentated_types,
        augmentated_num, method, target_category, ntypes,
        use_bf16=True)
    logits_bf = jax.block_until_ready(logits_bf)
    for v in feat_bf.values():
        jax.block_until_ready(v)
    assert logits_bf.shape == logits.shape
    assert feat_bf[target_category].shape == feat_dict[target_category].shape
    assert jnp.allclose(logits_bf.astype(jnp.float32), logits, atol=1e-1)

    print("KERNEL_OK")
</pallas_src>

<mosaic_0001>
module attributes {stable_mosaic.version = 11 : i64} {
  func.func @_target_path_kernel(%arg0: i32, %arg1: memref<8x16xf32, #tpu.memory_space<vmem>>, %arg2: memref<8x24xf32, #tpu.memory_space<vmem>>, %arg3: memref<8x24xf32, #tpu.memory_space<vmem>>, %arg4: memref<128x128xf32, #tpu.memory_space<vmem>>, %arg5: memref<1x128xf32, #tpu.memory_space<vmem>>, %arg6: memref<8x128xf32, #tpu.memory_space<vmem>>, %arg7: memref<8x128xf32, #tpu.memory_space<vmem>>) attributes {dimension_semantics = [#tpu.dimension_semantics<parallel>], iteration_bounds = array<i64: 1>, scalar_prefetch = 0 : i64, scratch_operands = 0 : i64, tpu.core_type = #tpu.core_type<tc>, window_params = [{transform_indices = @transform_0, window_bounds = array<i64: 8, 16>}, {transform_indices = @transform_1, window_bounds = array<i64: 8, 24>}, {transform_indices = @transform_2, window_bounds = array<i64: 8, 24>}, {pipeline_mode = #tpu.pipeline_mode<synchronous>, transform_indices = @transform_3, window_bounds = array<i64: 128, 128>}, {pipeline_mode = #tpu.pipeline_mode<synchronous>, transform_indices = @transform_4, window_bounds = array<i64: 1, 128>}, {transform_indices = @transform_5, window_bounds = array<i64: 8, 128>}, {transform_indices = @transform_6, window_bounds = array<i64: 8, 128>}]} {
    %c0 = arith.constant 0 : index
    %c0_0 = arith.constant 0 : index
    %0 = vector.load %arg1[%c0, %c0_0] : memref<8x16xf32, #tpu.memory_space<vmem>>, vector<8x16xf32>
    %c0_1 = arith.constant 0 : index
    %c0_2 = arith.constant 0 : index
    %1 = vector.load %arg2[%c0_1, %c0_2] : memref<8x24xf32, #tpu.memory_space<vmem>>, vector<8x24xf32>
    %2 = vector.extract_strided_slice %1 {offsets = [0, 0], sizes = [8, 8], strides = [1, 1]} : vector<8x24xf32> to vector<8x8xf32>
    %3 = vector.extract_strided_slice %1 {offsets = [0, 8], sizes = [8, 8], strides = [1, 1]} : vector<8x24xf32> to vector<8x8xf32>
    %4 = arith.addf %2, %3 : vector<8x8xf32>
    %5 = vector.extract_strided_slice %1 {offsets = [0, 16], sizes = [8, 8], strides = [1, 1]} : vector<8x24xf32> to vector<8x8xf32>
    %6 = arith.addf %4, %5 : vector<8x8xf32>
    %cst = arith.constant 0.333333343 : f32
    %7 = vector.broadcast %cst : f32 to vector<8x8xf32>
    %8 = arith.mulf %6, %7 : vector<8x8xf32>
    %c0_3 = arith.constant 0 : index
    %c0_4 = arith.constant 0 : index
    %9 = vector.load %arg3[%c0_3, %c0_4] : memref<8x24xf32, #tpu.memory_space<vmem>>, vector<8x24xf32>
    %10 = vector.extract_strided_slice %9 {offsets = [0, 0], sizes = [8, 8], strides = [1, 1]} : vector<8x24xf32> to vector<8x8xf32>
    %11 = vector.extract_strided_slice %9 {offsets = [0, 8], sizes = [8, 8], strides = [1, 1]} : vector<8x24xf32> to vector<8x8xf32>
    %12 = arith.addf %10, %11 : vector<8x8xf32>
    %13 = vector.extract_strided_slice %9 {offsets = [0, 16], sizes = [8, 8], strides = [1, 1]} : vector<8x24xf32> to vector<8x8xf32>
    %14 = arith.addf %12, %13 : vector<8x8xf32>
    %cst_5 = arith.constant 0.333333343 : f32
    %15 = vector.broadcast %cst_5 : f32 to vector<8x8xf32>
    %16 = arith.mulf %14, %15 : vector<8x8xf32>
    %cst_6 = arith.constant 0.000000e+00 : f32
    %17 = vector.broadcast %cst_6 : f32 to vector<8x96xf32>
    %18 = tpu.concatenate %0, %8, %16, %17 in 1 : vector<8x16xf32>, vector<8x8xf32>, vector<8x8xf32>, vector<8x96xf32> -> vector<8x128xf32>
    %c0_7 = arith.constant 0 : index
    %c0_8 = arith.constant 0 : index
    %19 = vector.load %arg6[%c0_7, %c0_8] : memref<8x128xf32, #tpu.memory_space<vmem>>, vector<8x128xf32>
    tpu.vector_store %arg6[%c0_7, %c0_8], %18 {strides = array<i32>} : memref<8x128xf32, #tpu.memory_space<vmem>>, vector<8x128xf32>,
    %c0_9 = arith.constant 0 : index
    %c0_10 = arith.constant 0 : index
    %20 = vector.load %arg4[%c0_9, %c0_10] : memref<128x128xf32, #tpu.memory_space<vmem>>, vector<128x128xf32>
    %cst_11 = arith.constant dense<0.000000e+00> : vector<8x128xf32>
    %21 = tpu.matmul %18, %20, %cst_11 {dimension_numbers = #tpu.dot_dimension_numbers<[1], [0], [0], [1], [0, 0, 1, 1], [], []>, precision = #tpu.contract_precision<fp32>} : vector<8x128xf32>, vector<128x128xf32>, vector<8x128xf32> -> vector<8x128xf32>
    %c0_12 = arith.constant 0 : index
    %c0_13 = arith.constant 0 : index
    %22 = vector.load %arg5[%c0_12, %c0_13] : memref<1x128xf32, #tpu.memory_space<vmem>>, vector<1x128xf32>
    %23 = vector.broadcast %22 : vector<1x128xf32> to vector<8x128xf32>
    %24 = arith.addf %21, %23 : vector<8x128xf32>
    %c0_14 = arith.constant 0 : index
    %c0_15 = arith.constant 0 : index
    %25 = vector.load %arg7[%c0_14, %c0_15] : memref<8x128xf32, #tpu.memory_space<vmem>>, vector<8x128xf32>
    tpu.vector_store %arg7[%c0_14, %c0_15], %24 {strides = array<i32>} : memref<8x128xf32, #tpu.memory_space<vmem>>, vector<8x128xf32>,
    return
  }
  func.func @transform_0(%arg0: i32) -> (i32, i32) {
    %c0_i32 = arith.constant 0 : i32
    %c0_i32_0 = arith.constant 0 : i32
    return %arg0, %c0_i32 : i32, i32
  }
  func.func @transform_1(%arg0: i32) -> (i32, i32) {
    %c0_i32 = arith.constant 0 : i32
    %c0_i32_0 = arith.constant 0 : i32
    return %arg0, %c0_i32 : i32, i32
  }
  func.func @transform_2(%arg0: i32) -> (i32, i32) {
    %c0_i32 = arith.constant 0 : i32
    %c0_i32_0 = arith.constant 0 : i32
    return %arg0, %c0_i32 : i32, i32
  }
  func.func @transform_3(%arg0: i32) -> (i32, i32) {
    %c0_i32 = arith.constant 0 : i32
    %c0_i32_0 = arith.constant 0 : i32
    %c0_i32_1 = arith.constant 0 : i32
    return %c0_i32, %c0_i32_0 : i32, i32
  }
  func.func @transform_4(%arg0: i32) -> (i32, i32) {
    %c0_i32 = arith.constant 0 : i32
    %c0_i32_0 = arith.constant 0 : i32
    %c0_i32_1 = arith.constant 0 : i32
    return %c0_i32, %c0_i32_0 : i32, i32
  }
  func.func @transform_5(%arg0: i32) -> (i32, i32) {
    %c0_i32 = arith.constant 0 : i32
    %c0_i32_0 = arith.constant 0 : i32
    return %arg0, %c0_i32 : i32, i32
  }
  func.func @transform_6(%arg0: i32) -> (i32, i32) {
    %c0_i32 = arith.constant 0 : i32
    %c0_i32_0 = arith.constant 0 : i32
    return %arg0, %c0_i32 : i32, i32
  }
}

</mosaic_0001>

<bundles_post_ra>
// kernel: tpu_custom_call.1
= control target key start
LH: loop header
LB: loop body
LE: loop exit
PB: predicated region body
PF: predicated region fallthrough
CT: control target
= control target key end

     0   :  { %12 = vsyncpa [#allocation3], 0  ;;  %s1827_s0 = inlined_call_operand.hbm [shape: f32[8,16], index: 0, kind: input, shape index: {}]   ;;  %s1828_s1 = inlined_call_operand.hbm [shape: f32[8,24], index: 1, kind: input, shape index: {}]   ;;  %s1829_s2 = inlined_call_operand.hbm [shape: f32[8,24], index: 2, kind: input, shape index: {}]   ;;  %s1830_s3 = inlined_call_operand.hbm [shape: f32[128,128], index: 3, kind: input, shape index: {}]   ;;  %s1831_s4 = inlined_call_operand.vmem [shape: f32[1,128], index: 4, kind: input, shape index: {}]   ;;  %s1832_s5 = inlined_call_operand.hbm [shape: f32[8,128], index: 5, kind: output, shape index: {0}]   ;;  %s1833_s6 = inlined_call_operand.hbm [shape: f32[8,128], index: 6, kind: output, shape index: {1}]  }
   0x1   :  { %13 = vsyncpa [#allocation6], 0 }
   0x2   :  { %14 = vsyncpa [#allocation9], 0 }
   0x3   :  { %15 = vsyncpa [#allocation4], 0 }
   0x4   :  { %16 = vsyncpa [#allocation12], 0  ;;  %s1431_s21 = smov [#allocation5]   ;;  %s1432_s23 = smov [#allocation2]  }
   0x5   :  { %s33_s22 = sshll.u32 %s1431_s21, 4  ;;  %s23_s24 = sshll.u32 %s1432_s23, 4  ;;  %s34_s22 = int_to_ptr.vmem [resolvable:$true] %s33_s22  ;;  %s24_s24 = int_to_ptr.vmem [resolvable:$true] %s23_s24 }
   0x6   :  { %s1289_s27 = scalar_lea.hbm %s1828_s1, 128 }
   0x7   :  { %p1290_p0 = scmp.ne.s32.totalorder %s1828_s1, %s1289_s27  ;;  %p1293_p1 = scmp.lt.u32.totalorder %s1289_s27, %s1828_s1 }
   0x9   :  { %p1295_p2 = pnand %p1293_p1, %p1290_p0 }
   0xb   :  { %1298 = shalt.err (!%p1295_p2)
}
   0xc   :  { %s1299_s8 = scalar_lea.vmem %s34_s22, 128  ;;  %p1304_p4 = scmp.lt.s32.totalorder %s34_s22, %s34_s22 }
   0xd   :  { %p1300_p3 = scmp.ne.s32.totalorder %s34_s22, %s1299_s8  ;;  %p1305_p5 = scmp.lt.s32.totalorder %s1299_s8, %s1299_s8 }
   0xf   :  { %p1306_p6 = por %p1305_p5, %p1304_p4 }
  0x11   :  { %p1307_p7 = pnand %p1306_p6, %p1300_p3 }
  0x13   :  { %1310 = shalt.err (!%p1307_p7)
}
  0x14   :  { %36 = dma.hbm_to_vmem [thread:$0]  %s1828_s1, 128, %s34_s22, [#allocation6]  }
  0x15   :  { %s1311_s13 = scalar_lea.hbm %s1827_s0, 128 }
  0x16   :  { %p1312_p8 = scmp.ne.s32.totalorder %s1827_s0, %s1311_s13  ;;  %p1315_p9 = scmp.lt.u32.totalorder %s1311_s13, %s1827_s0 }
  0x18   :  { %p1317_p10 = pnand %p1315_p9, %p1312_p8 }
  0x1a   :  { %1320 = shalt.err (!%p1317_p10)
}
  0x1b   :  { %s1321_s18 = scalar_lea.vmem %s24_s24, 128  ;;  %p1326_p12 = scmp.lt.s32.totalorder %s24_s24, %s24_s24 }
  0x1c   :  { %p1322_p11 = scmp.ne.s32.totalorder %s24_s24, %s1321_s18  ;;  %p1327_p13 = scmp.lt.s32.totalorder %s1321_s18, %s1321_s18 }
  0x1e   :  { %p1328_p0 = por %p1327_p13, %p1326_p12 }
  0x20   :  { %p1329_p1 = pnand %p1328_p0, %p1322_p11 }
  0x22   :  { %1332 = shalt.err (!%p1329_p1)
}
  0x23   :  { %26 = dma.hbm_to_vmem [thread:$0]  %s1827_s0, 128, %s24_s24, [#allocation3]  }
  0x24   :  { %s1433_s20 = smov [#allocation7]   ;;  %s1434_s22 = smov [#allocation8]  }
  0x25   :  { %s43_s21 = sshll.u32 %s1433_s20, 4  ;;  %s52_s23 = sshll.u32 %s1434_s22, 4  ;;  %s44_s21 = int_to_ptr.vmem [resolvable:$true] %s43_s21  ;;  %s1505_s23 = int_to_ptr.vmem [resolvable:$true] %s52_s23 }
  0x26   :  { %s1333_s27 = scalar_lea.hbm %s1829_s2, 128 }
  0x27   :  { %p1334_p2 = scmp.ne.s32.totalorder %s1829_s2, %s1333_s27  ;;  %p1337_p3 = scmp.lt.u32.totalorder %s1333_s27, %s1829_s2 }
  0x29   :  { %p1339_p4 = pnand %p1337_p3, %p1334_p2 }
  0x2b   :  { %1342 = shalt.err (!%p1339_p4)
}
  0x2c   :  { %s1343_s0 = scalar_lea.vmem %s44_s21, 128  ;;  %p1348_p6 = scmp.lt.s32.totalorder %s44_s21, %s44_s21 }
  0x2d   :  { %p1344_p5 = scmp.ne.s32.totalorder %s44_s21, %s1343_s0  ;;  %p1349_p7 = scmp.lt.s32.totalorder %s1343_s0, %s1343_s0 }
  0x2f   :  { %p1350_p8 = por %p1349_p7, %p1348_p6 }
  0x31   :  { %p1351_p9 = pnand %p1350_p8, %p1344_p5 }
  0x33   :  { %1354 = shalt.err (!%p1351_p9)
}
  0x34   :  { %46 = dma.hbm_to_vmem [thread:$0]  %s1829_s2, 128, %s44_s21, [#allocation6]  }
  0x35   :  { %s1355_s11 = scalar_lea.hbm %s1830_s3, 2048 }
  0x36   :  { %p1356_p10 = scmp.ne.s32.totalorder %s1830_s3, %s1355_s11  ;;  %p1359_p11 = scmp.lt.u32.totalorder %s1355_s11, %s1830_s3 }
  0x38   :  { %p1361_p12 = pnand %p1359_p11, %p1356_p10 }
  0x3a   :  { %1364 = shalt.err (!%p1361_p12)
}
  0x3b   :  { %s1365_s16 = scalar_lea.vmem %s1505_s23, 2048  ;;  %p1370_p0 = scmp.lt.s32.totalorder %s1505_s23, %s1505_s23 }
  0x3c   :  { %p1366_p13 = scmp.ne.s32.totalorder %s1505_s23, %s1365_s16  ;;  %p1371_p1 = scmp.lt.s32.totalorder %s1365_s16, %s1365_s16 }
  0x3e   :  { %p1372_p2 = por %p1371_p1, %p1370_p0 }
  0x40   :  { %p1373_p3 = pnand %p1372_p2, %p1366_p13 }
  0x42   :  { %1376 = shalt.err (!%p1373_p3)
}
  0x43   :  { %s1435_s2 = smov 128   ;;  %s1436_s17 = smov 8  }
  0x44   :  { %58 = dma.hbm_to_vmem [thread:$0]  %s1830_s3, 2048, %s1505_s23, [#allocation9], %s1435_s2, %s1435_s2, %s1436_s17  }
  0x45   :  { %1421 = dma.done.wait [#allocation3], 128  }
  0x46   :  { %1422 = vsyncadd [#allocation3], 4294967168 }
  0x47   :  { %1423 = dma.done.wait [#allocation6], 256  }
  0x48   :  { %1424 = vsyncadd [#allocation6], 4294967040 }
  0x49   :  { %1425 = dma.done.wait [#allocation9], 2048  }
  0x4a   :  { %1426 = vsyncadd [#allocation9], 4294965248  ;;  %v1437_v0 = vmov 0.0|0.0   ;;  %v1538_v1 = vld [vmem:[#allocation5] sm:$0xff]  ;;  %v1540_v2 = vld [vmem:[#allocation7] sm:$0xff]  ;;  %s1438_s19 = smov 120  }
  0x4b   :  { %1192 = vmatprep.subr.bf16.mxu0 %v1437_v0  ;;  %1120 = vmatprep.subr.bf16.mxu1 %v1437_v0  ;;  %v111_v3 = vld [vmem:[#allocation8] sm:$0xff]  ;;  %s1439_s3 = smov 112   ;;  %v112_v4 = vld [vmem:[#allocation8 + $0x8] sm:$0xff]  ;;  %v113_v6 = vld [vmem:[#allocation8 + $0x10] sm:$0xff]  ;;  %vm1440_vm0 = vmmov 0   ;;  %s1442_s20 = smov 16  }
  0x4c   :  { %76 = vrot.lane.b32.xlu0 %v1538_v1, %s1438_s19  ;;  %80 = vrot.lane.b32.xlu1 %v1538_v1, %s1439_s3  ;;  %v135_v5 = vand.u32 4294901760, %v111_v3  ;;  %v114_v7 = vld [vmem:[#allocation8 + $0x18] sm:$0xff]  ;;  %v138_v8 = vand.u32 4294901760, %v112_v4  ;;  %v141_v9 = vand.u32 4294901760, %v113_v6  ;;  %v115_v11 = vld [vmem:[#allocation8 + $0x20] sm:$0xff]  ;;  %v116_v12 = vld [vmem:[#allocation8 + $0x28] sm:$0xff] }
  0x4d   :  { %v144_v10 = vand.u32 4294901760, %v114_v7  ;;  %v117_v13 = vld [vmem:[#allocation8 + $0x30] sm:$0xff]  ;;  %v147_v15 = vand.u32 4294901760, %v115_v11  ;;  %v150_v16 = vand.u32 4294901760, %v116_v12  ;;  %v118_v17 = vld [vmem:[#allocation8 + $0x38] sm:$0xff]  ;;  %v119_v18 = vld [vmem:[#allocation8 + $0x40] sm:$0xff] }
  0x4e   :  { %v1544_v14 = vsub.f32 %v111_v3, %v135_v5  ;;  %v120_v19 = vld [vmem:[#allocation8 + $0x48] sm:$0xff]  ;;  %v1546_v20 = vpack.c.bf16 %v138_v8, %v135_v5  ;;  %v1548_v21 = vsub.f32 %v112_v4, %v138_v8  ;;  %v1550_v22 = vsub.f32 %v113_v6, %v141_v9  ;;  %v121_v38 = vld [vmem:[#allocation8 + $0x50] sm:$0xff]  ;;  %v122_v39 = vld [vmem:[#allocation8 + $0x58] sm:$0xff]  ;;  %s1443_s21 = smov 24   ;;  %s1444_s22 = smov [#allocation10]  }
  0x4f   :  { %v153_v23 = vand.u32 4294901760, %v117_v13  ;;  %v1554_v24 = vpack.c.bf16 %v144_v10, %v141_v9  ;;  %v1556_v25 = vsub.f32 %v114_v7, %v144_v10  ;;  %v1558_v26 = vsub.f32 %v115_v11, %v147_v15  ;;  %v123_v43 = vld [vmem:[#allocation8 + $0x60] sm:$0xff]  ;;  %v124_v44 = vld [vmem:[#allocation8 + $0x68] sm:$0xff]  ;;  %v125_v50 = vld [vmem:[#allocation8 + $0x70] sm:$0xff]  ;;  %s782_s23 = sshll.u32 %s1444_s22, 4  ;;  %s783_s23 = int_to_ptr.vmem [resolvable:$true] %s782_s23 }
  0x50   :  { %87 = vrot.lane.b32.xlu0 %v1540_v2, %s1438_s19  ;;  %91 = vrot.lane.b32.xlu1 %v1540_v2, %s1439_s3  ;;  %v156_v27 = vand.u32 4294901760, %v118_v17  ;;  %v1562_v28 = vsub.f32 %v116_v12, %v150_v16  ;;  %v159_v30 = vand.u32 4294901760, %v119_v18  ;;  %v162_v31 = vand.u32 4294901760, %v120_v19  ;;  %v126_v51 = vld [vmem:[#allocation8 + $0x78] sm:$0xff]  ;;  %s1377_s25 = scalar_lea.vmem %s783_s23, 128  ;;  %p1382_p5 = scmp.lt.s32.totalorder %s783_s23, %s783_s23 }
  0x51   :  { %1194 = vmatpush3.bf16.msra.mxu0 %v1546_v20  ;;  %1122 = vmatpush3.bf16.msra.mxu1 %v1546_v20  ;;  %v1564_v29 = vsub.f32 %v117_v13, %v153_v23  ;;  %v1576_v35 = vpack.c.bf16 %v150_v16, %v147_v15  ;;  %v165_v40 = vand.u32 4294901760, %v121_v38  ;;  %v168_v41 = vand.u32 4294901760, %v122_v39  ;;  %p1378_p4 = scmp.ne.s32.totalorder %s783_s23, %s1377_s25  ;;  %p1383_p6 = scmp.lt.s32.totalorder %s1377_s25, %s1377_s25 }
  0x52   :  { %1195 = vmatprep.subr.bf16.mxu0 %v1437_v0  ;;  %1123 = vmatprep.subr.bf16.mxu1 %v1437_v0  ;;  %v1568_v32 = vsub.f32 %v118_v17, %v156_v27  ;;  %v1570_v33 = vsub.f32 %v119_v18, %v159_v30  ;;  %v1572_v34 = vsub.f32 %v120_v19, %v162_v31  ;;  %v171_v47 = vand.u32 4294901760, %v123_v43 }
  0x53   :  { %v1582_v36 = vpack.c.bf16 %v156_v27, %v153_v23  ;;  %v1588_v37 = vpack.c.bf16 %v162_v31, %v159_v30  ;;  %v1596_v42 = vpack.c.bf16 %v168_v41, %v165_v40  ;;  %v1598_v45 = vsub.f32 %v121_v38, %v165_v40  ;;  %p1384_p7 = por %p1383_p6, %p1382_p5 }
  0x54   :  { %v1600_v46 = vsub.f32 %v122_v39, %v168_v41  ;;  %v174_v48 = vand.u32 4294901760, %v124_v44  ;;  %v177_v52 = vand.u32 4294901760, %v125_v50  ;;  %v180_v53 = vand.u32 4294901760, %v126_v51 }
  0x55   :  { %1197 = vmatpush3.bf16.msra.mxu0 %v1554_v24  ;;  %1125 = vmatpush3.bf16.msra.mxu1 %v1554_v24  ;;  %v1615_v58 = vsub.f32 %v123_v43, %v171_v47  ;;  %v228_v63 = vand.u32 4294901760, %v1544_v14  ;;  %v1441_v5 = vmov 0.0   ;;  %v242_v13 = vand.u32 4294901760, %v1550_v22  ;;  %p1385_p8 = pnand %p1384_p7, %p1378_p4 }
  0x56   :  { %1198 = vmatprep.subr.bf16.mxu0 %v1437_v0  ;;  %1126 = vmatprep.subr.bf16.mxu1 %v1437_v0  ;;  %v1606_v49 = vpack.c.bf16 %v174_v48, %v171_v47  ;;  %v1611_v56 = vpack.c.bf16 %v180_v53, %v177_v52  ;;  %v1617_v59 = vsub.f32 %v124_v44, %v174_v48  ;;  %v249_v15 = vand.u32 4294901760, %v1556_v25 }
  0x57   :  { %v1619_v60 = vsub.f32 %v125_v50, %v177_v52  ;;  %v1621_v61 = vsub.f32 %v126_v51, %v180_v53  ;;  %1047 = vmatprep.mubr.msk.f32.mxu0 %vm1440_vm0, %v1441_v5  ;;  %942 = vmatprep.mubr.msk.f32.mxu1 %vm1440_vm0, %v1441_v5  ;;  %v229_v8 = vsub.f32 %v1544_v14, %v228_v63  ;;  %v256_v31 = vand.u32 4294901760, %v1558_v26 }
  0x58   :  { %v1640_v17 = vpack.c.bf16 %v249_v15, %v242_v13  ;;  %v243_v18 = vsub.f32 %v1550_v22, %v242_v13  ;;  %v250_v19 = vsub.f32 %v1556_v25, %v249_v15  ;;  %v263_v38 = vand.u32 4294901760, %v1562_v28 }
  0x59   :  { %1200 = vmatpush3.bf16.msra.mxu0 %v1576_v35  ;;  %1128 = vmatpush3.bf16.msra.mxu1 %v1576_v35  ;;  %v230_v12 = vand.u32 4294901760, %v229_v8  ;;  %v257_v41 = vsub.f32 %v1558_v26, %v256_v31  ;;  %v270_v48 = vand.u32 4294901760, %v1564_v29  ;;  %v277_v50 = vand.u32 4294901760, %v1568_v32 }
  0x5a   :  { %1201 = vmatprep.subr.bf16.mxu0 %v1437_v0  ;;  %1129 = vmatprep.subr.bf16.mxu1 %v1437_v0  ;;  %v244_v27 = vand.u32 4294901760, %v243_v18  ;;  %v251_v30 = vand.u32 4294901760, %v250_v19  ;;  %v1650_v40 = vpack.c.bf16 %v263_v38, %v256_v31  ;;  %v264_v43 = vsub.f32 %v1562_v28, %v263_v38 }
  0x5b   :  { %v258_v44 = vand.u32 4294901760, %v257_v41  ;;  %v1658_v52 = vpack.c.bf16 %v277_v50, %v270_v48  ;;  %v271_v53 = vsub.f32 %v1564_v29, %v270_v48  ;;  %v312_v19 = vand.u32 4294901760, %v1615_v58 }
  0x5c   :  { %v1648_v39 = vpack.c.bf16 %v251_v30, %v244_v27  ;;  %v265_v47 = vand.u32 4294901760, %v264_v43  ;;  %v319_v27 = vand.u32 4294901760, %v1617_v59  ;;  %v333_v48 = vand.u32 4294901760, %v1621_v61 }
  0x5d   :  { %1203 = vmatpush3.bf16.msra.mxu0 %v1582_v36  ;;  %1131 = vmatpush3.bf16.msra.mxu1 %v1582_v36  ;;  %v313_v38 = vsub.f32 %v1615_v58, %v312_v19  ;;  %vm104_vm1 = vcmask 130048   ;;  %vm106_vm2 = vcmask 195584   ;;  %vm108_vm3 = vcmask 261120  }
  0x5e   :  { %1204 = vmatprep.subr.bf16.mxu0 %v1437_v0  ;;  %1132 = vmatprep.subr.bf16.mxu1 %v1437_v0  ;;  %v1656_v51 = vpack.c.bf16 %v265_v47, %v258_v44  ;;  %v1682_v31 = vpack.c.bf16 %v319_v27, %v312_v19  ;;  %v320_v41 = vsub.f32 %v1617_v59, %v319_v27  ;;  %v326_v47 = vand.u32 4294901760, %v1619_v60 }
  0x5f   :  { %v314_v43 = vand.u32 4294901760, %v313_v38 }
  0x60   :  { %v321_v44 = vand.u32 4294901760, %v320_v41 }
  0x61   :  { %1206 = vmatpush3.bf16.msra.mxu0 %v1588_v37  ;;  %1134 = vmatpush3.bf16.msra.mxu1 %v1588_v37 }
  0x62   :  { %1207 = vmatprep.subr.bf16.mxu0 %v1437_v0  ;;  %1135 = vmatprep.subr.bf16.mxu1 %v1437_v0 }
  0x65   :  { %1209 = vmatpush3.bf16.msra.mxu0 %v1596_v42  ;;  %1137 = vmatpush3.bf16.msra.mxu1 %v1596_v42 }
  0x66   :  { %1210 = vmatprep.subr.bf16.mxu0 %v1437_v0  ;;  %1138 = vmatprep.subr.bf16.mxu1 %v1437_v0 }
  0x69   :  { %1212 = vmatpush3.bf16.msra.mxu0 %v1606_v49  ;;  %1140 = vmatpush3.bf16.msra.mxu1 %v1606_v49 }
  0x6a   :  { %1213 = vmatprep.subr.bf16.mxu0 %v1437_v0  ;;  %1141 = vmatprep.subr.bf16.mxu1 %v1437_v0 }
  0x6d   :  { %1215 = vmatpush3.bf16.msra.mxu0 %v1611_v56  ;;  %1143 = vmatpush3.bf16.msra.mxu1 %v1611_v56 }
  0x6e   :  { %1216 = vmatprep.subr.bf16.mxu0 %v1437_v0  ;;  %1144 = vmatprep.subr.bf16.mxu1 %v1437_v0 }
  0xbe   :  { %v77_v54 = vpop.permute.xlu0 %76  ;;  %v81_v55 = vpop.permute.xlu1 %80 }
  0xbf   :  { %v79_v57 = vadd.f32 %v77_v54, %v1538_v1  ;;  %v235_v1 = vand.u32 4294901760, %v1548_v21  ;;  %v278_v54 = vsub.f32 %v1568_v32, %v277_v50  ;;  %v1163_v50 = vpack.c.bf16 %v321_v44, %v314_v43 }
  0xc1   :  { %v83_v62 = vadd.f32 %v81_v55, %v79_v57  ;;  %v1635_v9 = vpack.c.bf16 %v235_v1, %v228_v63  ;;  %v236_v10 = vsub.f32 %v1548_v21, %v235_v1  ;;  %v272_v55 = vand.u32 4294901760, %v271_v53 }
  0xc2   :  { %v88_v3 = vpop.permute.xlu0 %87  ;;  %v92_v4 = vpop.permute.xlu1 %91  ;;  %v279_v57 = vand.u32 4294901760, %v278_v54  ;;  %v291_v63 = vand.u32 4294901760, %v1572_v34  ;;  %v1238_v53 = vpack.c.bf16 %v333_v48, %v326_v47  ;;  %v327_v54 = vsub.f32 %v1619_v60, %v326_v47 }
  0xc3   :  { %v84_v6 = vmul.f32 0.33333334, %v83_v62  ;;  %v90_v7 = vadd.f32 %v88_v3, %v1540_v2  ;;  %v237_v2 = vand.u32 4294901760, %v236_v10  ;;  %v284_v62 = vand.u32 4294901760, %v1570_v33 }
  0xc4   :  { %v1664_v3 = vpack.c.bf16 %v279_v57, %v272_v55  ;;  %v298_v10 = vand.u32 4294901760, %v1598_v45  ;;  %v334_v55 = vsub.f32 %v1621_v61, %v333_v48  ;;  %v328_v57 = vand.u32 4294901760, %v327_v54 }
  0xc5   :  { %v94_v11 = vadd.f32 %v92_v4, %v90_v7  ;;  %97 = vrot.lane.b32.xlu0 %v84_v6, %s1442_s20  ;;  %v1644_v23 = vpack.c.bf16 %v237_v2, %v230_v12  ;;  %v1666_v4 = vpack.c.bf16 %v291_v63, %v284_v62  ;;  %v285_v1 = vsub.f32 %v1570_v33, %v284_v62 }
  0xc6   :  { %v292_v6 = vsub.f32 %v1572_v34, %v291_v63  ;;  %v299_v15 = vsub.f32 %v1598_v45, %v298_v10  ;;  %v335_v62 = vand.u32 4294901760, %v334_v55 }
  0xc7   :  { %v95_v16 = vmul.f32 0.33333334, %v94_v11  ;;  %v286_v7 = vand.u32 4294901760, %v285_v1  ;;  %v305_v11 = vand.u32 4294901760, %v1600_v46  ;;  %v1169_v1 = vpack.c.bf16 %v1548_v21, %v1544_v14 }
  0xc8   :  { %v293_v8 = vand.u32 4294901760, %v292_v6  ;;  %v1166_v63 = vpack.c.bf16 %v335_v62, %v328_v57  ;;  %v1172_v6 = vpack.c.bf16 %v1556_v25, %v1550_v22 }
  0xc9   :  { %101 = vrot.lane.b32.xlu1 %v95_v16, %s1443_s21  ;;  %v1674_v13 = vpack.c.bf16 %v305_v11, %v298_v10  ;;  %v306_v2 = vsub.f32 %v1600_v46, %v305_v11  ;;  %v300_v16 = vand.u32 4294901760, %v299_v15  ;;  %v1181_v10 = vpack.c.bf16 %v1572_v34, %v1570_v33 }
  0xca   :  { %v1672_v12 = vpack.c.bf16 %v293_v8, %v286_v7  ;;  %v1175_v7 = vpack.c.bf16 %v1562_v28, %v1558_v26  ;;  %v1178_v8 = vpack.c.bf16 %v1568_v32, %v1564_v29  ;;  %v1184_v11 = vpack.c.bf16 %v1600_v46, %v1598_v45 }
  0xcb   :  { %v307_v18 = vand.u32 4294901760, %v306_v2  ;;  %v1187_v15 = vpack.c.bf16 %v1617_v59, %v1615_v58  ;;  %v1190_v2 = vpack.c.bf16 %v1621_v61, %v1619_v60 }
  0xcd   :  { %v1680_v30 = vpack.c.bf16 %v307_v18, %v300_v16  ;;  %v73_v18 = vld [vmem:[#allocation2] sm:$0xff] }
 0x137   :  { %v98_v16 = vpop.permute.xlu0 %97 }
 0x138   :  { %v105_v19 = vsel %vm104_vm1, %v73_v18, %v98_v16 }
 0x13b   :  { %v102_v27 = vpop.permute.xlu1 %101 }
 0x13c   :  { %v107_v38 = vsel %vm106_vm2, %v105_v19, %v102_v27 }
 0x13d   :  { %v109_v41 = vsel %vm108_vm3, %v107_v38, 0.0 }
 0x13e   :  { %v1706_v43 = vand.u32 4294901760, %v109_v41  ;;  %110 = vst [vmem:[#allocation10] sm:$0xff] %v109_v41 }
 0x140   :  { %v1709_v44 = vsub.f32 %v109_v41, %v1706_v43 }
 0x142   :  { %v217_v47 = vand.u32 4294901760, %v1709_v44 }
 0x144   :  { %1048 = vmatmul.mubr.f32.vlgmr.msra.gmra.mrb[0].mxu0 %v217_v47  ;;  %v218_v48 = vsub.f32 %v1709_v44, %v217_v47 }
 0x145   :  { %1218 = vmatpush3.bf16.msra.mxu0 %v1635_v9  ;;  %1082 = vmatprep.mubr.msk.f32.mxu0 %vm1440_vm0, %v1441_v5 }
 0x146   :  { %1219 = vmatprep.subr.bf16.mxu0 %v1437_v0  ;;  %v219_v54 = vand.u32 4294901760, %v218_v48 }
 0x148   :  { %943 = vmatmul.mubr.f32.vlgmr.msra.gmra.mrb[0].mxu1 %v219_v54 }
 0x149   :  { %1146 = vmatpush3.bf16.msra.mxu1 %v1644_v23  ;;  %1221 = vmatpush3.bf16.msra.mxu0 %v1640_v17 }
 0x14a   :  { %1147 = vmatprep.subr.bf16.mxu1 %v1437_v0  ;;  %1222 = vmatprep.subr.bf16.mxu0 %v1437_v0 }
 0x14b   :  { %977 = vmatprep.mubr.msk.f32.mxu1 %vm1440_vm0, %v1441_v5 }
 0x14d   :  { %1149 = vmatpush3.bf16.msra.mxu1 %v1648_v39  ;;  %1224 = vmatpush3.bf16.msra.mxu0 %v1650_v40 }
 0x14e   :  { %1150 = vmatprep.subr.bf16.mxu1 %v1437_v0  ;;  %1225 = vmatprep.subr.bf16.mxu0 %v1437_v0 }
 0x151   :  { %1152 = vmatpush3.bf16.msra.mxu1 %v1656_v51  ;;  %1227 = vmatpush3.bf16.msra.mxu0 %v1658_v52 }
 0x152   :  { %1153 = vmatprep.subr.bf16.mxu1 %v1437_v0  ;;  %1228 = vmatprep.subr.bf16.mxu0 %v1437_v0 }
 0x155   :  { %1155 = vmatpush3.bf16.msra.mxu1 %v1664_v3  ;;  %1230 = vmatpush3.bf16.msra.mxu0 %v1666_v4 }
 0x156   :  { %1156 = vmatprep.subr.bf16.mxu1 %v1437_v0  ;;  %1231 = vmatprep.subr.bf16.mxu0 %v1437_v0 }
 0x159   :  { %1158 = vmatpush3.bf16.msra.mxu1 %v1672_v12  ;;  %1233 = vmatpush3.bf16.msra.mxu0 %v1674_v13 }
 0x15a   :  { %1159 = vmatprep.subr.bf16.mxu1 %v1437_v0  ;;  %1234 = vmatprep.subr.bf16.mxu0 %v1437_v0 }
 0x15d   :  { %1161 = vmatpush3.bf16.msra.mxu1 %v1680_v30  ;;  %1236 = vmatpush3.bf16.msra.mxu0 %v1682_v31 }
 0x15e   :  { %1162 = vmatprep.subr.bf16.mxu1 %v1437_v0  ;;  %1237 = vmatprep.subr.bf16.mxu0 %v1437_v0 }
 0x161   :  { %1164 = vmatpush3.bf16.msra.mxu1 %v1163_v50  ;;  %1239 = vmatpush3.bf16.msra.mxu0 %v1238_v53 }
 0x162   :  { %1165 = vmatprep.subr.bf16.mxu1 %v1437_v0  ;;  %1240 = vmatprep.subr.bf16.mxu0 %v1437_v0 }
 0x164   :  { %1083 = vmatmul.mubr.f32.vlgmr.msra.gmra.mrb[0].mxu0 %v1706_v43 }
 0x165   :  { %1167 = vmatpush3.bf16.msra.mxu1 %v1166_v63  ;;  %1242 = vmatpush3.bf16.msra.mxu0 %v1546_v20 }
 0x166   :  { %1168 = vmatprep.subr.bf16.mxu1 %v1437_v0  ;;  %1243 = vmatprep.subr.bf16.mxu0 %v1437_v0 }
 0x167   :  { %1117 = vmatprep.mubr.msk.f32.mxu0 %vm1440_vm0, %v1441_v5 }
 0x168   :  { %978 = vmatmul.mubr.f32.vlgmr.msra.gmra.mrb[0].mxu1 %v1706_v43 }
 0x169   :  { %1170 = vmatpush3.bf16.msra.mxu1 %v1169_v1  ;;  %1245 = vmatpush3.bf16.msra.mxu0 %v1554_v24 }
 0x16a   :  { %1171 = vmatprep.subr.bf16.mxu1 %v1437_v0  ;;  %1246 = vmatprep.subr.bf16.mxu0 %v1437_v0 }
 0x16b   :  { %1012 = vmatprep.mubr.msk.f32.mxu1 %vm1440_vm0, %v1441_v5 }
 0x16d   :  { %1173 = vmatpush3.bf16.msra.mxu1 %v1172_v6  ;;  %1248 = vmatpush3.bf16.msra.mxu0 %v1576_v35 }
 0x16e   :  { %1174 = vmatprep.subr.bf16.mxu1 %v1437_v0  ;;  %1249 = vmatprep.subr.bf16.mxu0 %v1437_v0 }
 0x171   :  { %1176 = vmatpush3.bf16.msra.mxu1 %v1175_v7  ;;  %1251 = vmatpush3.bf16.msra.mxu0 %v1582_v36 }
 0x172   :  { %1177 = vmatprep.subr.bf16.mxu1 %v1437_v0  ;;  %1252 = vmatprep.subr.bf16.mxu0 %v1437_v0 }
 0x175   :  { %1179 = vmatpush3.bf16.msra.mxu1 %v1178_v8  ;;  %1254 = vmatpush3.bf16.msra.mxu0 %v1588_v37 }
 0x176   :  { %1180 = vmatprep.subr.bf16.mxu1 %v1437_v0  ;;  %1255 = vmatprep.subr.bf16.mxu0 %v1437_v0 }
 0x179   :  { %1182 = vmatpush3.bf16.msra.mxu1 %v1181_v10  ;;  %1257 = vmatpush3.bf16.msra.mxu0 %v1596_v42 }
 0x17a   :  { %1183 = vmatprep.subr.bf16.mxu1 %v1437_v0  ;;  %1258 = vmatprep.subr.bf16.mxu0 %v1437_v0 }
 0x17d   :  { %1185 = vmatpush3.bf16.msra.mxu1 %v1184_v11  ;;  %1260 = vmatpush3.bf16.msra.mxu0 %v1606_v49 }
 0x17e   :  { %1186 = vmatprep.subr.bf16.mxu1 %v1437_v0  ;;  %1261 = vmatprep.subr.bf16.mxu0 %v1437_v0 }
 0x181   :  { %1188 = vmatpush3.bf16.msra.mxu1 %v1187_v15  ;;  %1263 = vmatpush3.bf16.msra.mxu0 %v1611_v56 }
 0x182   :  { %1189 = vmatprep.subr.bf16.mxu1 %v1437_v0 }
 0x184   :  { %1118 = vmatmul.mubr.f32.vlgmr.msra.gmra.mrb[0].mxu0 %v1706_v43 }
 0x185   :  { %1191 = vmatpush3.bf16.msra.mxu1 %v1190_v2 }
 0x188   :  { %1013 = vmatmul.mubr.f32.vlgmr.msra.gmra.mrb[0].mxu1 %v1709_v44 }
 0x189   :  { %1388 = shalt.err (!%p1385_p8)
}
 0x18a   :  { %s1389_s28 = scalar_lea.hbm %s1832_s5, 128 }
 0x18b   :  { %p1390_p9 = scmp.ne.s32.totalorder %s1832_s5, %s1389_s28  ;;  %p1393_p10 = scmp.lt.u32.totalorder %s1389_s28, %s1832_s5 }
 0x18d   :  { %p1395_p11 = pnand %p1393_p10, %p1390_p9 }
 0x18f   :  { %1398 = shalt.err (!%p1395_p11)
}
 0x190   :  { %785 = dma.vmem_to_hbm [thread:$0]  %s783_s23, 128, %s1832_s5, [#allocation4]   ;;  %v807_v20 = vld [vmem:[%s1831_s4] ss:$0 sm:$0xff] }
 0x191   :  { %s1445_s11 = smov [#allocation11]  }
 0x192   :  { %s792_s12 = sshll.u32 %s1445_s11, 4  ;;  %s793_s12 = int_to_ptr.vmem [resolvable:$true] %s792_s12 }
 0x193   :  { %s1399_s13 = scalar_lea.vmem %s793_s12, 128  ;;  %p1404_p13 = scmp.lt.s32.totalorder %s793_s12, %s793_s12 }
 0x194   :  { %p1400_p12 = scmp.ne.s32.totalorder %s793_s12, %s1399_s13  ;;  %p1405_p0 = scmp.lt.s32.totalorder %s1399_s13, %s1399_s13 }
 0x196   :  { %p1406_p1 = por %p1405_p0, %p1404_p13 }
 0x198   :  { %p1407_p2 = pnand %p1406_p1, %p1400_p12 }
 0x257   :  { %v771_v0 = vpop.f32.mrb[0].mxu0 }
 0x258   :  { %v1119_v14 = vpop.f32.mrb[1].mxu0 }
 0x25b   :  { %v476_v21 = vpop.f32.mrb[0].mxu1 }
 0x25c   :  { %v1264_v22 = vadd.f32 %v807_v20, %v476_v21  ;;  %v1014_v24 = vpop.f32.mrb[1].mxu1 }
 0x25e   :  { %v1265_v25 = vadd.f32 %v1264_v22, %v771_v0 }
 0x260   :  { %775 = vst [vmem:[#allocation11] sm:$0xff] %v1265_v25 }
 0x261   :  { %1410 = shalt.err (!%p1407_p2)
}
 0x262   :  { %s1411_s15 = scalar_lea.hbm %s1833_s6, 128 }
 0x263   :  { %p1412_p3 = scmp.ne.s32.totalorder %s1833_s6, %s1411_s15  ;;  %p1415_p4 = scmp.lt.u32.totalorder %s1411_s15, %s1833_s6 }
 0x265   :  { %p1417_p5 = pnand %p1415_p4, %p1412_p3 }
 0x267   :  { %1420 = shalt.err (!%p1417_p5)
}
 0x268   :  { %795 = dma.vmem_to_hbm [thread:$0]  %s793_s12, 128, %s1833_s6, [#allocation12]  }
 0x269   :  { %1427 = dma.done.wait [#allocation4], 128  }
 0x26a   :  { %1428 = vsyncadd [#allocation4], 4294967168 }
 0x26b   :  { %1429 = dma.done.wait [#allocation12], 128  }
 0x26c   :  { %1430 = vsyncadd [#allocation12], 4294967168 }
 0x26d   :  { %802 = vsyncpa [#allocation3], 1 }
 0x26e   :  { %803 = vsyncpa [#allocation6], 1 }
 0x26f   :  { %804 = vsyncpa [#allocation9], 1 }
 0x270   :  { %805 = vsyncpa [#allocation4], 1 }
 0x271   :  { %806 = vsyncpa [#allocation12], 1 }

</bundles_post_ra>
